<compile_context>
chip_gen: v7x
topology: tpu7x:2x2x1
jax: 0.10.0
libtpu: 0.0.40
codegen_flags: <defaults>
</compile_context>

<pallas_src>
import jax
import jax.numpy as jnp
from jax.experimental import pallas as pl
from jax.experimental.pallas import tpu as pltpu


def mlp_tanh_kernel(x_ref, w1t_ref, b1_ref, w2t_ref, o_ref):
    # fc1: x @ W1^T.  W1^T was materialized once in the wrapper as [D, H], so
    # the contraction is (x dim 1) x (w1t dim 0) — native MXU layout.
    h = jnp.dot(x_ref[...], w1t_ref[...],
                preferred_element_type=jnp.float32)        # (TB, H) f32 acc
    h = h + b1_ref[...]                                    # (1, H) sublane broadcast, f32 VPU
    a = jnp.tanh(h)                                        # f32 EUP transcendental (free slot)

    # fc2 (no bias): a @ W2^T with W2^T pre-materialized as [H, C].
    # TODO(synk): if C / H ever grow and the kernel becomes store-bound, fold
    # batch into the lane dim for a lane-dense output slab (wrapper reshapes
    # back); at C=4 / H=32 the kernel is launch-latency bound so it is a no-op.
    o_ref[...] = jnp.dot(a, w2t_ref[...],
                         preferred_element_type=jnp.float32).astype(o_ref.dtype)


def _round_up(x, m):
    return ((x + m - 1) // m) * m


def _vmem_budget_bytes():
    """Generation-aware VMEM request.

    ~48 MiB on v7x-class chips (64 MiB physical per TensorCore), ~100 MiB on
    v5e/v6e (128 MiB physical).  Conservative 48 MiB if the chip can't be
    queried (e.g. older jax without get_tpu_info).
    """
    cap = None
    get_info = getattr(pltpu, "get_tpu_info", None)
    if get_info is not None:
        try:
            cap = int(get_info().vmem_capacity_bytes)
        except Exception:
            cap = None
    if cap is None:
        return 48 << 20
    if cap <= (96 << 20):          # v7x-class: 64 MiB per TC
        return 48 << 20
    return 100 << 20               # v5e / v6e: 128 MiB physical


def _tile_vmem_need(tb, D, H, C, itemsize=4):
    """Per-call VMEM estimate for a batch tile of tb rows (all f32 worst case).

    2x streaming x/out tiles (double-buffered by the pipeline), 2x the
    constant-index-map parameter blocks (default BlockSpec pipelining still
    allocates two buffers for them), plus the (TB, H) f32 intermediates.
    """
    streaming = 2 * tb * (D + C)
    params = 2 * (H * D + H + C * H)
    interm = 2 * tb * H
    return (streaming + params + interm) * itemsize


_TILE_CANDIDATES = (4096, 2048, 1024, 512, 256, 128, 64, 32, 16, 8)


def _choose_batch_tile(B, D, H, C, vmem_budget):
    """Largest sublane-aligned batch tile that fits the VMEM budget.

    Non-divisible batches are padded (never degraded to tiny divisor tiles),
    and a single-step grid is split in two when the batch allows so the
    "parallel" axis can shard across v7x's two TensorCores.
    """
    target = _round_up(max(B, 8), 8)         # padded batch lower bound
    tb = 8
    for cand in _TILE_CANDIDATES:
        if cand <= target and _tile_vmem_need(cand, D, H, C) <= vmem_budget // 2:
            tb = cand
            break
    steps = -(-target // tb)
    if steps == 1 and target >= 16:
        # Give the megacore >=2 grid steps (cheap on single-TC chips: one
        # extra ~0.35 us step; up to 2x throughput on v7x).
        tb = _round_up(target // 2, 8)
        steps = -(-target // tb)
    return tb, steps


def model_tanh_forward(x, w1, b1, w2, use_bf16=False):
    """Fused forward pass of model_tanh.

    x : [B, D] f32
    w1: [H, D] f32   (torch fc1.weight layout)
    b1: [H]    f32   (torch fc1.bias)
    w2: [C, H] f32   (torch fc2.weight layout)
    returns [B, C] f32
    """
    B, D = x.shape
    H = w1.shape[0]
    C = w2.shape[0]

    # One-time wrapper-side transposes: a single tiny HBM pass amortized over
    # the whole grid; the kernel then contracts natively shaped [K, N] weights.
    w1t = jnp.transpose(w1)            # [D, H]
    w2t = jnp.transpose(w2)            # [H, C]
    b1r = b1.reshape(1, H)             # 2-D bias for a clean sublane broadcast

    if use_bf16:
        # Halves streaming-x DMA bytes and resident-weight VMEM on v6e/v7x;
        # MXU still accumulates in f32 and bias-add/tanh stay f32.  Keep off
        # on v5e (no bf16 VPU/EUP) and loosen tolerances if enabling in tests.
        x = x.astype(jnp.bfloat16)
        w1t = w1t.astype(jnp.bfloat16)
        w2t = w2t.astype(jnp.bfloat16)

    budget = _vmem_budget_bytes()
    tb, steps = _choose_batch_tile(B, D, H, C, budget)
    Bp = tb * steps
    if Bp != B:
        # Pad instead of shrinking the tile: per-grid-step overhead dominates.
        x = jnp.pad(x, ((0, Bp - B), (0, 0)))

    need = _tile_vmem_need(tb, D, H, C)
    vmem_limit = min(max(2 * need, 4 << 20), budget)

    out = pl.pallas_call(
        mlp_tanh_kernel,
        out_shape=jax.ShapeDtypeStruct((Bp, C), jnp.float32),
        grid=(steps,),
        in_specs=[
            # x tiled over batch; feature dim is the full array dim.
            pl.BlockSpec((tb, D), lambda i: (i, 0)),
            # Parameters: constant block index => DMA'd once, VMEM-resident
            # across the whole grid (their 2x pipeline buffers are counted in
            # the VMEM budget above).
            pl.BlockSpec((D, H), lambda i: (0, 0)),
            pl.BlockSpec((1, H), lambda i: (0, 0)),
            pl.BlockSpec((H, C), lambda i: (0, 0)),
        ],
        out_specs=pl.BlockSpec((tb, C), lambda i: (i, 0)),
        compiler_params=pltpu.CompilerParams(
            dimension_semantics=("parallel",),
            vmem_limit_bytes=vmem_limit,
        ),
    )(x, w1t, b1r, w2t)

    return out[:B] if Bp != B else out


def _reference(x, w1, b1, w2):
    return jnp.tanh(x @ w1.T + b1) @ w2.T


# TODO(synk): tanh_activation_dx / evaluate_derivative are auxiliary methods of
# the module (not part of forward()) and are not implemented here.

if __name__ == "__main__":
    # Small shapes consistent with the module: input_size=4, hidden=32, classes=4.
    B, D, H, C = 8, 4, 32, 4

    key = jax.random.PRNGKey(0)
    kx, kw1, kb1, kw2 = jax.random.split(key, 4)

    x = jax.random.normal(kx, (B, D), dtype=jnp.float32)
    # Parameters in torch layout: weight [out, in], bias [out].
    w1 = jax.random.normal(kw1, (H, D), dtype=jnp.float32) * 0.5
    b1 = jax.random.normal(kb1, (H,), dtype=jnp.float32) * 0.1
    w2 = jax.random.normal(kw2, (C, H), dtype=jnp.float32) * 0.5

    fwd = jax.jit(model_tanh_forward)

    out = jax.block_until_ready(fwd(x, w1, b1, w2))
    ref = _reference(x, w1, b1, w2)
    assert out.shape == (B, C)
    assert jnp.allclose(out, ref, atol=2e-5, rtol=1e-5), "mismatch vs reference (small batch)"

    # Non-divisible batch: exercises padding + the >=2-step parallel grid
    # (weights stay VMEM-resident across steps).
    B2 = 1000
    x2 = jax.random.normal(jax.random.PRNGKey(1), (B2, D), dtype=jnp.float32)
    out2 = jax.block_until_ready(fwd(x2, w1, b1, w2))
    ref2 = _reference(x2, w1, b1, w2)
    assert out2.shape == (B2, C)
    assert jnp.allclose(out2, ref2, atol=2e-5, rtol=1e-5), "mismatch vs reference (padded grid)"

    print("KERNEL_OK")
</pallas_src>

<mosaic_0001>
module attributes {stable_mosaic.version = 11 : i64} {
  func.func @mlp_tanh_kernel(%arg0: i32, %arg1: memref<8x4xf32, #tpu.memory_space<vmem>>, %arg2: memref<4x32xf32, #tpu.memory_space<vmem>>, %arg3: memref<1x32xf32, #tpu.memory_space<vmem>>, %arg4: memref<32x4xf32, #tpu.memory_space<vmem>>, %arg5: memref<8x4xf32, #tpu.memory_space<vmem>>) attributes {dimension_semantics = [#tpu.dimension_semantics<parallel>], iteration_bounds = array<i64: 1>, scalar_prefetch = 0 : i64, scratch_operands = 0 : i64, tpu.core_type = #tpu.core_type<tc>, window_params = [{transform_indices = @transform_0, window_bounds = array<i64: 8, 4>}, {pipeline_mode = #tpu.pipeline_mode<synchronous>, transform_indices = @transform_1, window_bounds = array<i64: 4, 32>}, {pipeline_mode = #tpu.pipeline_mode<synchronous>, transform_indices = @transform_2, window_bounds = array<i64: 1, 32>}, {pipeline_mode = #tpu.pipeline_mode<synchronous>, transform_indices = @transform_3, window_bounds = array<i64: 32, 4>}, {transform_indices = @transform_4, window_bounds = array<i64: 8, 4>}]} {
    %c0 = arith.constant 0 : index
    %c0_0 = arith.constant 0 : index
    %0 = vector.load %arg1[%c0, %c0_0] : memref<8x4xf32, #tpu.memory_space<vmem>>, vector<8x4xf32>
    %c0_1 = arith.constant 0 : index
    %c0_2 = arith.constant 0 : index
    %1 = vector.load %arg2[%c0_1, %c0_2] : memref<4x32xf32, #tpu.memory_space<vmem>>, vector<4x32xf32>
    %cst = arith.constant dense<0.000000e+00> : vector<8x32xf32>
    %2 = tpu.matmul %0, %1, %cst {dimension_numbers = #tpu.dot_dimension_numbers<[1], [0], [0], [1], [0, 0, 1, 1], [], []>} : vector<8x4xf32>, vector<4x32xf32>, vector<8x32xf32> -> vector<8x32xf32>
    %c0_3 = arith.constant 0 : index
    %c0_4 = arith.constant 0 : index
    %3 = vector.load %arg3[%c0_3, %c0_4] : memref<1x32xf32, #tpu.memory_space<vmem>>, vector<1x32xf32>
    %4 = vector.broadcast %3 : vector<1x32xf32> to vector<8x32xf32>
    %5 = arith.addf %2, %4 : vector<8x32xf32>
    %6 = math.tanh %5 : vector<8x32xf32>
    %c0_5 = arith.constant 0 : index
    %c0_6 = arith.constant 0 : index
    %7 = vector.load %arg4[%c0_5, %c0_6] : memref<32x4xf32, #tpu.memory_space<vmem>>, vector<32x4xf32>
    %cst_7 = arith.constant dense<0.000000e+00> : vector<8x4xf32>
    %8 = tpu.matmul %6, %7, %cst_7 {dimension_numbers = #tpu.dot_dimension_numbers<[1], [0], [0], [1], [0, 0, 1, 1], [], []>} : vector<8x32xf32>, vector<32x4xf32>, vector<8x4xf32> -> vector<8x4xf32>
    %c0_8 = arith.constant 0 : index
    %c0_9 = arith.constant 0 : index
    %9 = vector.load %arg5[%c0_8, %c0_9] : memref<8x4xf32, #tpu.memory_space<vmem>>, vector<8x4xf32>
    tpu.vector_store %arg5[%c0_8, %c0_9], %8 {strides = array<i32>} : memref<8x4xf32, #tpu.memory_space<vmem>>, vector<8x4xf32>,
    return
  }
  func.func @transform_0(%arg0: i32) -> (i32, i32) {
    %c0_i32 = arith.constant 0 : i32
    %c0_i32_0 = arith.constant 0 : i32
    return %arg0, %c0_i32 : i32, i32
  }
  func.func @transform_1(%arg0: i32) -> (i32, i32) {
    %c0_i32 = arith.constant 0 : i32
    %c0_i32_0 = arith.constant 0 : i32
    %c0_i32_1 = arith.constant 0 : i32
    return %c0_i32, %c0_i32_0 : i32, i32
  }
  func.func @transform_2(%arg0: i32) -> (i32, i32) {
    %c0_i32 = arith.constant 0 : i32
    %c0_i32_0 = arith.constant 0 : i32
    %c0_i32_1 = arith.constant 0 : i32
    return %c0_i32, %c0_i32_0 : i32, i32
  }
  func.func @transform_3(%arg0: i32) -> (i32, i32) {
    %c0_i32 = arith.constant 0 : i32
    %c0_i32_0 = arith.constant 0 : i32
    %c0_i32_1 = arith.constant 0 : i32
    return %c0_i32, %c0_i32_0 : i32, i32
  }
  func.func @transform_4(%arg0: i32) -> (i32, i32) {
    %c0_i32 = arith.constant 0 : i32
    %c0_i32_0 = arith.constant 0 : i32
    return %arg0, %c0_i32 : i32, i32
  }
}

</mosaic_0001>

<bundles_post_ra>
// kernel: model_tanh_forward.1
= control target key start
LH: loop header
LB: loop body
LE: loop exit
PB: predicated region body
PF: predicated region fallthrough
CT: control target
= control target key end

     0   :  { %vm30_vm0 = vcmask 1043456   ;;  %vm26_vm1 = vcmask 31744   ;;  %v226_v0 = vmov 0.0   ;;  %vm227_vm2 = vmmov 0   ;;  %s280_s1 = inlined_call_operand.vmem [shape: f32[4,32], index: 1, kind: input, shape index: {}]   ;;  %s281_s0 = inlined_call_operand.vmem [shape: f32[8,4], index: 0, kind: input, shape index: {}]   ;;  %s282_s3 = inlined_call_operand.vmem [shape: f32[32,4], index: 3, kind: input, shape index: {}]   ;;  %s283_s2 = inlined_call_operand.vmem [shape: f32[1,32], index: 2, kind: input, shape index: {}]   ;;  %s284_s4 = inlined_call_operand.vmem [shape: f32[8,4], index: 4, kind: output, shape index: {}]  }
   0x1   :  { %199 = vmatprep.subr.mxu0 %v226_v0  ;;  %v18_v1 = vld [vmem:[%s280_s1] sm:$0xf]  ;;  %201 = vmatprep.mubr.msk.f32.mxu0 %vm227_vm2, %v226_v0  ;;  %v228_v3 = vmov 0.0|0.0   ;;  %v106_v5 = vld [vmem:[%s282_s3 + $0x8] sm:$0xff]  ;;  %v107_v6 = vld [vmem:[%s282_s3 + $0x10] sm:$0xff]  ;;  %vm109_vm3 = vcmask 261120  }
   0x2   :  { %v17_v2 = vld [vmem:[%s281_s0] sm:$0xff]  ;;  %200 = vmatpush3.msk.msra.mxu0 %vm30_vm0, %v18_v1  ;;  %212 = vmatprep.mubr.msk.f32.mxu1 %vm227_vm2, %v226_v0  ;;  %v108_v8 = vld [vmem:[%s282_s3 + $0x18] sm:$0xff] }
   0x3   :  { %202 = vmatmul.mubr.msk.f32.vlgmr.msra.gmra.mrb[0].mxu0 %vm26_vm1, %v17_v2  ;;  %215 = vmatprep.subr.bf16.mxu1 %v228_v3  ;;  %v105_v4 = vld [vmem:[%s282_s3] sm:$0xff]  ;;  %v219_v9 = vpack.c.bf16 %v108_v8, %v107_v6 }
   0x4   :  { %v216_v7 = vpack.c.bf16 %v106_v5, %v105_v4  ;;  %v188_v10 = vld [vmem:[%s283_s2] ss:$0 sm:$0xff] }
   0x6   :  { %217 = vmatpush3.bf16.msra.mxu1 %v216_v7 }
   0x7   :  { %218 = vmatprep.subr.bf16.mxu1 %v228_v3 }
   0xa   :  { %220 = vmatpush3.bf16.msra.mxu1 %v219_v9 }
  0xd6   :  { %v100_v11 = vpop.f32.mrb[0].mxu0 }
  0xd7   :  { %v101_v12 = vadd.f32 %v188_v10, %v100_v11  ;;  %v203_v13 = vpop.f32.mrb[1].mxu0 }
  0xd9   :  { %224 = vtanh.f32 %v101_v12 }
  0xe3   :  { %v225_v14 = vpop.eup %224 }
  0xe4   :  { %213 = vmatmul.mubr.msk.f32.vlgmr.msra.gmra.mrb[0].mxu1 %vm109_vm3, %v225_v14 }
 0x1b7   :  { %v179_v15 = vpop.f32.mrb[0].mxu1 }
 0x1b8   :  { %183 = vst.msk [vmem:[%s284_s4] sm:$0xff] %vm26_vm1, %v179_v15  ;;  %v214_v16 = vpop.f32.mrb[1].mxu1 }

</bundles_post_ra>
